<compile_context>
chip_gen: v6e
topology: v6e:2x2x1
jax: 0.10.0
libtpu: 0.0.40
codegen_flags: <defaults>
</compile_context>

<pallas_src>
import functools

import jax
import jax.numpy as jnp
from jax import lax
from jax.experimental import pallas as pl
from jax.experimental.pallas import tpu as pltpu


def _dadsh2_kernel(f_ref, bsel_ref, s_ref, b_ref, out_ref, sb_acc, bb_acc, *,
                   n_cols, tile_n, code_length, eta, mu, gamma, varphi, c,
                   inv_mn, hash_const, need_mask):
    split = pl.program_id(0)
    i = pl.program_id(1)
    n_inner = pl.num_programs(1)

    @pl.when(i == 0)
    def _init():
        sb_acc[...] = jnp.zeros_like(sb_acc)
        bb_acc[...] = jnp.zeros_like(bb_acc)

    if need_mask:
        # Logical (un-clamped) tile index -> number of in-bounds columns.
        g = split * n_inner + i
        valid = jnp.clip(n_cols - g * tile_n, 0, tile_n)

        @pl.when(valid < tile_n)
        def _zero_tail():
            # Ragged last tile / duplicated over-run tiles: zero the columns
            # >= `valid` in the VMEM copies so they contribute exactly 0.
            # Runs on at most a couple of tiles; full tiles skip it entirely.
            col_b = lax.broadcasted_iota(jnp.int32, b_ref.shape, 1)
            b = b_ref[...]
            b_ref[...] = jnp.where(col_b < valid, b, jnp.zeros_like(b))
            col_s = lax.broadcasted_iota(jnp.int32, s_ref.shape, 1)
            s = s_ref[...]
            s_ref[...] = jnp.where(col_s < valid, s, jnp.zeros_like(s))

    # Streamed tiles stay in their compact dtype (bf16 / int8); contraction is
    # over TILE_N, accumulation in f32 (int32 for the int8 MXU path).
    s_t = s_ref[...]                                      # (m, TILE_N)
    b_t = b_ref[...]                                      # (L, TILE_N)
    pet = jnp.int32 if jnp.issubdtype(s_t.dtype, jnp.integer) else jnp.float32
    dims = (((1,), (1,)), ((), ()))
    sb_acc[...] += lax.dot_general(s_t, b_t, dims,
                                   preferred_element_type=pet
                                   ).astype(jnp.float32)   # += S_tile @ B_tile
    bb_acc[...] += lax.dot_general(b_t, b_t, dims,
                                   preferred_element_type=pet
                                   ).astype(jnp.float32)   # += B_tile^T @ B_tile

    @pl.when(i == n_inner - 1)
    def _finalize():
        F = f_ref[...]                                    # (m, L) f32, resident
        ftf = lax.dot_general(F, F, (((0,), (0,)), ((), ())),
                              preferred_element_type=jnp.float32)      # (L, L)

        # This split's share of the hash loss (constant term charged to split 0).
        hash_part = ((-2.0 * code_length) * jnp.sum(F * sb_acc[...])
                     + jnp.sum(ftf * bb_acc[...]))

        # Tiny F-only terms + quantization, computed once (charged to split 0).
        F2 = F * F
        sum_f2 = jnp.sum(F2)
        dl1 = eta * sum_f2                                # F^T @ I_m == F^T
        dl2 = mu * (jnp.sum(ftf * ftf) - 2.0 * c * sum_f2 + c * c * code_length)
        dl3 = gamma * jnp.sum(jnp.abs(F) * (1.0 - F2))
        dq = F - bsel_ref[...]
        ql = varphi * jnp.sum(dq * dq)
        extras = hash_const + dl1 + dl2 + dl3 + ql

        total = hash_part + jnp.where(split == 0, extras, 0.0)
        out_ref[...] = jnp.full(out_ref.shape, total * inv_mn, jnp.float32)


def dadsh2_loss(F, B, S, index, *, code_length, eta, mu, gamma, varphi,
                tile_n=32768, n_splits=2, io_dtype=jnp.bfloat16,
                b_is_transposed=False):
    """Pallas implementation of DADSH2_Loss.forward. Returns a scalar float32.

    Preconditions (standard DADSH setting): S and B take values in {-1, +1},
    so the compact dtype (bf16, or int8 on v5e/v6e via ``io_dtype=jnp.int8``)
    and the Gram-matrix expansion of the hash residual are exact.

    For best performance store the retrieval codes pre-transposed (L, N) and
    already in ``io_dtype`` and call with ``b_is_transposed=True`` so the
    wrapper does no extra HBM passes over the large operands.
    """
    F = jnp.asarray(F, jnp.float32)
    m, L = F.shape
    if b_is_transposed:
        Lb, N = B.shape
    else:
        N, Lb = B.shape
    assert Lb == L and S.shape == (m, N) and index.shape == (m,)

    Bt = B if b_is_transposed else B.T        # (L, N): lane-dense streaming layout
    if Bt.dtype != io_dtype:
        Bt = Bt.astype(io_dtype)
    if S.dtype != io_dtype:
        S = S.astype(io_dtype)
    idx = index.astype(jnp.int32)

    # Quantization-term gather B[index, :] is tiny (m x L): do it in plain JAX,
    # off the kernel's critical path.
    b_sel = jnp.take(Bt, idx, axis=1).T.astype(jnp.float32)          # (m, L)

    # N-axis tiling: as large as comfortably fits double-buffered VMEM.
    assert tile_n % 128 == 0, "tile_n must be a multiple of 128"
    tn = int(tile_n)
    bytes_per_col = (max(L, 16) + max(m, 16)) * jnp.dtype(io_dtype).itemsize
    while tn > 1024 and 4 * bytes_per_col * tn > 48 * 1024 * 1024:
        tn //= 2                               # keep working set well under VMEM
    if N <= tn:
        tn = int(N)
    n_tiles = pl.cdiv(N, tn)
    n_splits = max(1, min(int(n_splits), n_tiles))   # 2 -> both v7x TensorCores
    n_inner = pl.cdiv(n_tiles, n_splits)
    need_mask = (N % tn != 0) or (n_splits * n_inner != n_tiles)

    def stream_map(s, i):
        # Clamp over-run tiles of the last split onto the final real tile; the
        # kernel masks their columns to zero, so they contribute nothing.
        return 0, jnp.minimum(s * n_inner + i, n_tiles - 1)

    kernel = functools.partial(
        _dadsh2_kernel,
        n_cols=int(N), tile_n=int(tn), code_length=float(code_length),
        eta=float(eta), mu=float(mu), gamma=float(gamma), varphi=float(varphi),
        c=2.0 * float(m) / 3.0, inv_mn=1.0 / (float(m) * float(N)),
        hash_const=float(code_length) ** 2 * float(m) * float(N),
        need_mask=bool(need_mask))

    partials = pl.pallas_call(
        kernel,
        out_shape=jax.ShapeDtypeStruct((n_splits, 8, 128), jnp.float32),
        grid_spec=pltpu.PrefetchScalarGridSpec(
            num_scalar_prefetch=0,
            grid=(n_splits, n_inner),
            in_specs=[
                pl.BlockSpec((m, L), lambda s, i: (0, 0)),   # F        (resident)
                pl.BlockSpec((m, L), lambda s, i: (0, 0)),   # B[index] (resident)
                pl.BlockSpec((m, tn), stream_map),           # S tile   (streamed)
                pl.BlockSpec((L, tn), stream_map),           # B^T tile (streamed)
                # TODO(synk): if DMA is still exposed at tile boundaries, add
                # pipeline_mode=pl.Buffered(3) to the two streamed specs.
            ],
            out_specs=pl.BlockSpec((1, 8, 128), lambda s, i: (s, 0, 0)),
            scratch_shapes=[
                pltpu.VMEM((m, L), jnp.float32),   # running  S   @ B   (m, L)
                pltpu.VMEM((L, L), jnp.float32),   # running  B^T @ B   (L, L)
            ]),
        compiler_params=pltpu.CompilerParams(
            dimension_semantics=("parallel", "arbitrary"),
            vmem_limit_bytes=64 * 1024 * 1024),
    )(F, b_sel, S, Bt)

    # One tiny partial per grid split (one per v7x TensorCore); sum in JAX.
    return jnp.sum(partials[:, 0, 0])


def dadsh2_loss_ref(F, B, S, index, *, code_length, eta, mu, gamma, varphi):
    """Pure-JAX reference mirroring the PyTorch forward exactly."""
    m = index.shape[0]
    Ft = F.T
    I2 = jnp.eye(code_length, dtype=F.dtype)
    dl1 = eta * jnp.sum(Ft ** 2)                      # F.t() @ eye(m) == F.t()
    dl2 = mu * jnp.sum((Ft @ F - 2.0 * m / 3.0 * I2) ** 2)
    dl3 = gamma * jnp.sum(jnp.abs(Ft) * (1.0 - Ft ** 2))
    hl = jnp.sum((code_length * S - F @ B.T) ** 2)
    ql = varphi * jnp.sum((F - B[index, :]) ** 2)
    return (dl1 + dl2 + dl3 + hl + ql) / (F.shape[0] * B.shape[0])


if __name__ == "__main__":
    # Hyper-parameters (the module's __init__ arguments).
    code_length = 16
    eta, mu, gamma, varphi = 0.1, 0.2, 0.3, 0.5

    # Small DADSH-consistent shapes: F (m, L) relaxed codes, B (N, L) database
    # codes in {-1,+1}, S (m, N) similarity in {-1,+1}, index (m,).
    m, N, L = 8, 300, code_length
    key = jax.random.PRNGKey(0)
    k1, k2, k3, k4 = jax.random.split(key, 4)
    F = jax.random.uniform(k1, (m, L), jnp.float32, -1.0, 1.0)
    B = jnp.where(jax.random.uniform(k2, (N, L)) > 0.5, 1.0, -1.0).astype(jnp.float32)
    S = jnp.where(jax.random.uniform(k3, (m, N)) > 0.5, 1.0, -1.0).astype(jnp.float32)
    index = jax.random.randint(k4, (m,), 0, N, dtype=jnp.int32)

    ref = dadsh2_loss_ref(F, B, S, index, code_length=code_length,
                          eta=eta, mu=mu, gamma=gamma, varphi=varphi)

    # Persistent compact storage of the two large +-1 operands (no wrapper-side
    # pad / cast / transpose passes over them at call time).
    Bt_c = B.T.astype(jnp.bfloat16)           # (L, N) lane-dense streaming layout
    S_c = S.astype(jnp.bfloat16)

    # 1) tiny tile: multi-tile streaming, ragged last tile, 2-way grid split.
    loss_tiled = dadsh2_loss(F, Bt_c, S_c, index, code_length=code_length,
                             eta=eta, mu=mu, gamma=gamma, varphi=varphi,
                             tile_n=128, n_splits=2, b_is_transposed=True)
    # 2) default large tile: whole N resident in a single tile.
    loss_single = dadsh2_loss(F, B, S, index, code_length=code_length,
                              eta=eta, mu=mu, gamma=gamma, varphi=varphi)
    jax.block_until_ready((loss_tiled, loss_single))

    assert jnp.allclose(loss_tiled, ref, rtol=1e-4, atol=1e-4), \
        (float(loss_tiled), float(ref))
    assert jnp.allclose(loss_single, ref, rtol=1e-4, atol=1e-4), \
        (float(loss_single), float(ref))
    print("KERNEL_OK")
</pallas_src>

<mosaic_0001>
module attributes {stable_mosaic.version = 11 : i64} {
  func.func @_dadsh2_kernel(%arg0: i32, %arg1: i32, %arg2: memref<8x16xf32, #tpu.memory_space<vmem>>, %arg3: memref<8x16xf32, #tpu.memory_space<vmem>>, %arg4: memref<8x128xbf16, #tpu.memory_space<vmem>>, %arg5: memref<16x128xbf16, #tpu.memory_space<vmem>>, %arg6: memref<1x8x128xf32, #tpu.memory_space<vmem>>, %arg7: memref<8x16xf32, #tpu.memory_space<vmem>>, %arg8: memref<16x16xf32, #tpu.memory_space<vmem>>) attributes {dimension_semantics = [#tpu.dimension_semantics<parallel>, #tpu.dimension_semantics<arbitrary>], iteration_bounds = array<i64: 2, 2>, scalar_prefetch = 0 : i64, scratch_operands = 2 : i64, tpu.core_type = #tpu.core_type<tc>, window_params = [{pipeline_mode = #tpu.pipeline_mode<synchronous>, transform_indices = @transform_0, window_bounds = array<i64: 8, 16>}, {pipeline_mode = #tpu.pipeline_mode<synchronous>, transform_indices = @transform_1, window_bounds = array<i64: 8, 16>}, {transform_indices = @transform_2, window_bounds = array<i64: 8, 128>}, {transform_indices = @transform_3, window_bounds = array<i64: 16, 128>}, {transform_indices = @transform_4, window_bounds = array<i64: 1, 8, 128>}]} {
    %c0_i32 = arith.constant 0 : i32
    %0 = arith.cmpi eq, %arg1, %c0_i32 : i32
    %1 = arith.extui %0 : i1 to i32
    %c0_i32_0 = arith.constant 0 : i32
    %2 = arith.cmpi ne, %1, %c0_i32_0 : i32
    scf.if %2 {
      %cst_18 = arith.constant 0.000000e+00 : f32
      %25 = vector.broadcast %cst_18 : f32 to vector<8x16xf32>
      %c0_19 = arith.constant 0 : index
      %c0_20 = arith.constant 0 : index
      %26 = vector.load %arg7[%c0_19, %c0_20] : memref<8x16xf32, #tpu.memory_space<vmem>>, vector<8x16xf32>
      tpu.vector_store %arg7[%c0_19, %c0_20], %25 {strides = array<i32>} : memref<8x16xf32, #tpu.memory_space<vmem>>, vector<8x16xf32>,
      %cst_21 = arith.constant 0.000000e+00 : f32
      %27 = vector.broadcast %cst_21 : f32 to vector<16x16xf32>
      %c0_22 = arith.constant 0 : index
      %c0_23 = arith.constant 0 : index
      %28 = vector.load %arg8[%c0_22, %c0_23] : memref<16x16xf32, #tpu.memory_space<vmem>>, vector<16x16xf32>
      tpu.vector_store %arg8[%c0_22, %c0_23], %27 {strides = array<i32>} : memref<16x16xf32, #tpu.memory_space<vmem>>, vector<16x16xf32>,
    } else {
    }
    %c2_i32 = arith.constant 2 : i32
    %3 = arith.muli %arg0, %c2_i32 : i32
    %4 = arith.addi %3, %arg1 : i32
    %c128_i32 = arith.constant 128 : i32
    %5 = arith.muli %4, %c128_i32 : i32
    %c300_i32 = arith.constant 300 : i32
    %6 = arith.subi %c300_i32, %5 : i32
    %c0_i32_1 = arith.constant 0 : i32
    %c128_i32_2 = arith.constant 128 : i32
    %7 = arith.maxsi %c0_i32_1, %6 : i32
    %8 = arith.minsi %c128_i32_2, %7 : i32
    %c128_i32_3 = arith.constant 128 : i32
    %9 = arith.cmpi slt, %8, %c128_i32_3 : i32
    %10 = arith.extui %9 : i1 to i32
    %c0_i32_4 = arith.constant 0 : i32
    %11 = arith.cmpi ne, %10, %c0_i32_4 : i32
    scf.if %11 {
      %25 = tpu.iota {dimensions = array<i32: 1>} : vector<16x128xi32>
      %c0_18 = arith.constant 0 : index
      %c0_19 = arith.constant 0 : index
      %26 = vector.load %arg5[%c0_18, %c0_19] : memref<16x128xbf16, #tpu.memory_space<vmem>>, vector<16x128xbf16>
      %27 = vector.broadcast %8 : i32 to vector<16x128xi32>
      %28 = arith.cmpi slt, %25, %27 : vector<16x128xi32>
      %cst_20 = arith.constant 0.000000e+00 : bf16
      %29 = vector.broadcast %cst_20 : bf16 to vector<16x128xbf16>
      %30 = arith.select %28, %26, %29 : vector<16x128xi1>, vector<16x128xbf16>
      %c0_21 = arith.constant 0 : index
      %c0_22 = arith.constant 0 : index
      %31 = vector.load %arg5[%c0_21, %c0_22] : memref<16x128xbf16, #tpu.memory_space<vmem>>, vector<16x128xbf16>
      tpu.vector_store %arg5[%c0_21, %c0_22], %30 {strides = array<i32>} : memref<16x128xbf16, #tpu.memory_space<vmem>>, vector<16x128xbf16>,
      %32 = tpu.iota {dimensions = array<i32: 1>} : vector<8x128xi32>
      %c0_23 = arith.constant 0 : index
      %c0_24 = arith.constant 0 : index
      %33 = vector.load %arg4[%c0_23, %c0_24] : memref<8x128xbf16, #tpu.memory_space<vmem>>, vector<8x128xbf16>
      %34 = vector.broadcast %8 : i32 to vector<8x128xi32>
      %35 = arith.cmpi slt, %32, %34 : vector<8x128xi32>
      %cst_25 = arith.constant 0.000000e+00 : bf16
      %36 = vector.broadcast %cst_25 : bf16 to vector<8x128xbf16>
      %37 = arith.select %35, %33, %36 : vector<8x128xi1>, vector<8x128xbf16>
      %c0_26 = arith.constant 0 : index
      %c0_27 = arith.constant 0 : index
      %38 = vector.load %arg4[%c0_26, %c0_27] : memref<8x128xbf16, #tpu.memory_space<vmem>>, vector<8x128xbf16>
      tpu.vector_store %arg4[%c0_26, %c0_27], %37 {strides = array<i32>} : memref<8x128xbf16, #tpu.memory_space<vmem>>, vector<8x128xbf16>,
    } else {
    }
    %c0 = arith.constant 0 : index
    %c0_5 = arith.constant 0 : index
    %12 = vector.load %arg4[%c0, %c0_5] : memref<8x128xbf16, #tpu.memory_space<vmem>>, vector<8x128xbf16>
    %c0_6 = arith.constant 0 : index
    %c0_7 = arith.constant 0 : index
    %13 = vector.load %arg5[%c0_6, %c0_7] : memref<16x128xbf16, #tpu.memory_space<vmem>>, vector<16x128xbf16>
    %c0_8 = arith.constant 0 : index
    %c0_9 = arith.constant 0 : index
    %14 = vector.load %arg7[%c0_8, %c0_9] : memref<8x16xf32, #tpu.memory_space<vmem>>, vector<8x16xf32>
    %cst = arith.constant dense<0.000000e+00> : vector<8x16xf32>
    %15 = tpu.matmul %12, %13, %cst {dimension_numbers = #tpu.dot_dimension_numbers<[1], [1], [0], [0], [0, 0, 1, 0], [], []>} : vector<8x128xbf16>, vector<16x128xbf16>, vector<8x16xf32> -> vector<8x16xf32>
    %16 = arith.addf %14, %15 : vector<8x16xf32>
    %c0_10 = arith.constant 0 : index
    %c0_11 = arith.constant 0 : index
    %17 = vector.load %arg7[%c0_10, %c0_11] : memref<8x16xf32, #tpu.memory_space<vmem>>, vector<8x16xf32>
    tpu.vector_store %arg7[%c0_10, %c0_11], %16 {strides = array<i32>} : memref<8x16xf32, #tpu.memory_space<vmem>>, vector<8x16xf32>,
    %c0_12 = arith.constant 0 : index
    %c0_13 = arith.constant 0 : index
    %18 = vector.load %arg8[%c0_12, %c0_13] : memref<16x16xf32, #tpu.memory_space<vmem>>, vector<16x16xf32>
    %cst_14 = arith.constant dense<0.000000e+00> : vector<16x16xf32>
    %19 = tpu.matmul %13, %13, %cst_14 {dimension_numbers = #tpu.dot_dimension_numbers<[1], [1], [0], [0], [0, 0, 1, 0], [], []>} : vector<16x128xbf16>, vector<16x128xbf16>, vector<16x16xf32> -> vector<16x16xf32>
    %20 = arith.addf %18, %19 : vector<16x16xf32>
    %c0_15 = arith.constant 0 : index
    %c0_16 = arith.constant 0 : index
    %21 = vector.load %arg8[%c0_15, %c0_16] : memref<16x16xf32, #tpu.memory_space<vmem>>, vector<16x16xf32>
    tpu.vector_store %arg8[%c0_15, %c0_16], %20 {strides = array<i32>} : memref<16x16xf32, #tpu.memory_space<vmem>>, vector<16x16xf32>,
    %c1_i32 = arith.constant 1 : i32
    %22 = arith.cmpi eq, %arg1, %c1_i32 : i32
    %23 = arith.extui %22 : i1 to i32
    %c0_i32_17 = arith.constant 0 : i32
    %24 = arith.cmpi ne, %23, %c0_i32_17 : i32
    scf.if %24 {
      %c0_18 = arith.constant 0 : index
      %c0_19 = arith.constant 0 : index
      %25 = vector.load %arg2[%c0_18, %c0_19] : memref<8x16xf32, #tpu.memory_space<vmem>>, vector<8x16xf32>
      %cst_20 = arith.constant dense<0.000000e+00> : vector<16x16xf32>
      %26 = tpu.matmul %25, %25, %cst_20 {dimension_numbers = #tpu.dot_dimension_numbers<[0], [0], [1], [1], [0, 1, 1, 1], [], []>} : vector<8x16xf32>, vector<8x16xf32>, vector<16x16xf32> -> vector<16x16xf32>
      %c0_21 = arith.constant 0 : index
      %c0_22 = arith.constant 0 : index
      %27 = vector.load %arg7[%c0_21, %c0_22] : memref<8x16xf32, #tpu.memory_space<vmem>>, vector<8x16xf32>
      %28 = arith.mulf %25, %27 : vector<8x16xf32>
      %29 = vector.shape_cast %28 : vector<8x16xf32> to vector<1x8x16xf32>
      %cst_23 = arith.constant dense<0.000000e+00> : vector<1xf32>
      %30 = vector.multi_reduction <add>, %29, %cst_23 [1, 2] : vector<1x8x16xf32> to vector<1xf32>
      %31 = vector.shape_cast %30 : vector<1xf32> to vector<1x1x1xf32>
      %32 = vector.extract %31[0, 0, 0] : f32 from vector<1x1x1xf32>
      %cst_24 = arith.constant -3.200000e+01 : f32
      %33 = arith.mulf %cst_24, %32 : f32
      %c0_25 = arith.constant 0 : index
      %c0_26 = arith.constant 0 : index
      %34 = vector.load %arg8[%c0_25, %c0_26] : memref<16x16xf32, #tpu.memory_space<vmem>>, vector<16x16xf32>
      %35 = arith.mulf %26, %34 : vector<16x16xf32>
      %36 = vector.shape_cast %35 : vector<16x16xf32> to vector<1x16x16xf32>
      %cst_27 = arith.constant dense<0.000000e+00> : vector<1xf32>
      %37 = vector.multi_reduction <add>, %36, %cst_27 [1, 2] : vector<1x16x16xf32> to vector<1xf32>
      %38 = vector.shape_cast %37 : vector<1xf32> to vector<1x1x1xf32>
      %39 = vector.extract %38[0, 0, 0] : f32 from vector<1x1x1xf32>
      %40 = arith.addf %33, %39 : f32
      %41 = arith.mulf %25, %25 : vector<8x16xf32>
      %42 = vector.shape_cast %41 : vector<8x16xf32> to vector<1x8x16xf32>
      %cst_28 = arith.constant dense<0.000000e+00> : vector<1xf32>
      %43 = vector.multi_reduction <add>, %42, %cst_28 [1, 2] : vector<1x8x16xf32> to vector<1xf32>
      %44 = vector.shape_cast %43 : vector<1xf32> to vector<1x1x1xf32>
      %45 = vector.extract %44[0, 0, 0] : f32 from vector<1x1x1xf32>
      %cst_29 = arith.constant 1.000000e-01 : f32
      %46 = arith.mulf %cst_29, %45 : f32
      %47 = arith.mulf %26, %26 : vector<16x16xf32>
      %48 = vector.shape_cast %47 : vector<16x16xf32> to vector<1x16x16xf32>
      %cst_30 = arith.constant dense<0.000000e+00> : vector<1xf32>
      %49 = vector.multi_reduction <add>, %48, %cst_30 [1, 2] : vector<1x16x16xf32> to vector<1xf32>
      %50 = vector.shape_cast %49 : vector<1xf32> to vector<1x1x1xf32>
      %51 = vector.extract %50[0, 0, 0] : f32 from vector<1x1x1xf32>
      %cst_31 = arith.constant 10.666667 : f32
      %52 = arith.mulf %cst_31, %45 : f32
      %53 = arith.subf %51, %52 : f32
      %cst_32 = arith.constant 455.111115 : f32
      %54 = arith.addf %53, %cst_32 : f32
      %cst_33 = arith.constant 2.000000e-01 : f32
      %55 = arith.mulf %cst_33, %54 : f32
      %56 = math.absf %25 : vector<8x16xf32>
      %cst_34 = arith.constant 1.000000e+00 : f32
      %57 = vector.broadcast %cst_34 : f32 to vector<8x16xf32>
      %58 = arith.subf %57, %41 : vector<8x16xf32>
      %59 = arith.mulf %56, %58 : vector<8x16xf32>
      %60 = vector.shape_cast %59 : vector<8x16xf32> to vector<1x8x16xf32>
      %cst_35 = arith.constant dense<0.000000e+00> : vector<1xf32>
      %61 = vector.multi_reduction <add>, %60, %cst_35 [1, 2] : vector<1x8x16xf32> to vector<1xf32>
      %62 = vector.shape_cast %61 : vector<1xf32> to vector<1x1x1xf32>
      %63 = vector.extract %62[0, 0, 0] : f32 from vector<1x1x1xf32>
      %cst_36 = arith.constant 3.000000e-01 : f32
      %64 = arith.mulf %cst_36, %63 : f32
      %c0_37 = arith.constant 0 : index
      %c0_38 = arith.constant 0 : index
      %65 = vector.load %arg3[%c0_37, %c0_38] : memref<8x16xf32, #tpu.memory_space<vmem>>, vector<8x16xf32>
      %66 = arith.subf %25, %65 : vector<8x16xf32>
      %67 = arith.mulf %66, %66 : vector<8x16xf32>
      %68 = vector.shape_cast %67 : vector<8x16xf32> to vector<1x8x16xf32>
      %cst_39 = arith.constant dense<0.000000e+00> : vector<1xf32>
      %69 = vector.multi_reduction <add>, %68, %cst_39 [1, 2] : vector<1x8x16xf32> to vector<1xf32>
      %70 = vector.shape_cast %69 : vector<1xf32> to vector<1x1x1xf32>
      %71 = vector.extract %70[0, 0, 0] : f32 from vector<1x1x1xf32>
      %cst_40 = arith.constant 5.000000e-01 : f32
      %72 = arith.mulf %cst_40, %71 : f32
      %cst_41 = arith.constant 6.144000e+05 : f32
      %73 = arith.addf %cst_41, %46 : f32
      %74 = arith.addf %73, %55 : f32
      %75 = arith.addf %74, %64 : f32
      %76 = arith.addf %75, %72 : f32
      %c0_i32_42 = arith.constant 0 : i32
      %77 = arith.cmpi eq, %arg0, %c0_i32_42 : i32
      %cst_43 = arith.constant 0.000000e+00 : f32
      %78 = arith.select %77, %76, %cst_43 : f32
      %79 = arith.addf %40, %78 : f32
      %cst_44 = arith.constant 4.16666677E-4 : f32
      %80 = arith.mulf %79, %cst_44 : f32
      %81 = vector.broadcast %80 : f32 to vector<1x8x128xf32>
      %c0_45 = arith.constant 0 : index
      %c0_46 = arith.constant 0 : index
      %c0_47 = arith.constant 0 : index
      %82 = vector.load %arg6[%c0_45, %c0_46, %c0_47] : memref<1x8x128xf32, #tpu.memory_space<vmem>>, vector<1x8x128xf32>
      tpu.vector_store %arg6[%c0_45, %c0_46, %c0_47], %81 {strides = array<i32>} : memref<1x8x128xf32, #tpu.memory_space<vmem>>, vector<1x8x128xf32>,
    } else {
    }
    return
  }
  func.func @transform_0(%arg0: i32, %arg1: i32) -> (i32, i32) {
    %c0_i32 = arith.constant 0 : i32
    %c0_i32_0 = arith.constant 0 : i32
    %c0_i32_1 = arith.constant 0 : i32
    return %c0_i32, %c0_i32_0 : i32, i32
  }
  func.func @transform_1(%arg0: i32, %arg1: i32) -> (i32, i32) {
    %c0_i32 = arith.constant 0 : i32
    %c0_i32_0 = arith.constant 0 : i32
    %c0_i32_1 = arith.constant 0 : i32
    return %c0_i32, %c0_i32_0 : i32, i32
  }
  func.func @transform_2(%arg0: i32, %arg1: i32) -> (i32, i32) {
    %c2_i32 = arith.constant 2 : i32
    %0 = arith.muli %arg0, %c2_i32 : i32
    %1 = arith.addi %0, %arg1 : i32
    %c2_i32_0 = arith.constant 2 : i32
    %2 = arith.minsi %1, %c2_i32_0 : i32
    %c0_i32 = arith.constant 0 : i32
    %c0_i32_1 = arith.constant 0 : i32
    return %c0_i32, %2 : i32, i32
  }
  func.func @transform_3(%arg0: i32, %arg1: i32) -> (i32, i32) {
    %c2_i32 = arith.constant 2 : i32
    %0 = arith.muli %arg0, %c2_i32 : i32
    %1 = arith.addi %0, %arg1 : i32
    %c2_i32_0 = arith.constant 2 : i32
    %2 = arith.minsi %1, %c2_i32_0 : i32
    %c0_i32 = arith.constant 0 : i32
    %c0_i32_1 = arith.constant 0 : i32
    return %c0_i32, %2 : i32, i32
  }
  func.func @transform_4(%arg0: i32, %arg1: i32) -> (i32, i32, i32) {
    %c0_i32 = arith.constant 0 : i32
    %c0_i32_0 = arith.constant 0 : i32
    %c0_i32_1 = arith.constant 0 : i32
    return %arg0, %c0_i32, %c0_i32_0 : i32, i32, i32
  }
}

</mosaic_0001>

<bundles_post_ra>
// kernel: tpu_custom_call.1
= control target key start
LH: loop header
LB: loop body
LE: loop exit
PB: predicated region body
PF: predicated region fallthrough
CT: control target
= control target key end

     0   :  { %s1580_s0 = inlined_call_operand.hbm [shape: f32[8,16], index: 0, kind: input, shape index: {}]   ;;  %s1581_s1 = inlined_call_operand.hbm [shape: f32[8,16], index: 1, kind: input, shape index: {}]   ;;  %s1582_s2 = inlined_call_operand.hbm [shape: bf16[8,300], index: 2, kind: input, shape index: {}]   ;;  %s1583_s3 = inlined_call_operand.hbm [shape: bf16[16,300], index: 3, kind: input, shape index: {}]   ;;  %s1584_s4 = inlined_call_operand.hbm [shape: f32[2,8,128], index: 4, kind: output, shape index: {}]  }
   0x1   :  { %1596 = sst [smem:[#allocation24_spill]] %s1580_s0 }
   0x2   :  { %1597 = sst [smem:[#allocation25_spill]] %s1581_s1 }
   0x3   :  { %1598 = sst [smem:[#allocation26_spill]] %s1582_s2 }
   0x4   :  { %1599 = sst [smem:[#allocation27_spill]] %s1583_s3 }
   0x5   :  { %1600 = sst [smem:[#allocation28_spill]] %s1584_s4 }
   0x6   :  { %9 = vsyncpa [#allocation5], 0 }
   0x7   :  { %10 = vsyncpa [#allocation8], 0 }
   0x8   :  { %11 = vsyncpa [#allocation6], 0 }
   0x9   :  { %13 = vsyncpa [#allocation6 + $0x1], 0  ;;  %s1289_s15 = smov 0   ;;  %s1291_s16 = smov 0  }
   0xa   :  { %s1293_s17 = smov 0   ;;  %s1295_s18 = smov 0  }
   0xb   :  { %s1297_s19 = smov 0   ;;  %s1299_s20 = smov 0  }
   0xc   :  { %s1301_s21 = smov 0   ;;  %s1303_s22 = smov 0  }
   0xd   :  { %s1305_s23 = smov 0   ;;  %s1307_s24 = smov 0  }
   0xe   :  { %s1309_s25 = smov 0  }
   0xf LB: > { %1601 = sst [smem:[#allocation16_spill]] %s1211_s15  ;;  %s1343_s26 = sadd.s32 4294967295, %s1251_s25   ;;  %s1251_s25 = sphi %s1309_s25, %s19_s25   ;;  %s1247_s24 = sphi %s1307_s24, %s1652_s24   ;;  %s1243_s23 = sphi %s1305_s23, %s1651_s23   ;;  %s1239_s22 = sphi %s1303_s22, %s1650_s22   ;;  %s1235_s21 = sphi %s1301_s21, %s1641_s21   ;;  %s1231_s20 = sphi %s1299_s20, %s1649_s20   ;;  %s1227_s19 = sphi %s1297_s19, %s1648_s19   ;;  %s1223_s18 = sphi %s1295_s18, %s1647_s18   ;;  %s1219_s17 = sphi %s1293_s17, %s1646_s17   ;;  %s1215_s16 = sphi %s1291_s16, %s1645_s16   ;;  %s1211_s15 = sphi %s1289_s15, %s1644_s15  }
  0x10   : > { %1602 = sst [smem:[#allocation17_spill]] %s1235_s21  ;;  %s803_s27 = sadd.s32 4294967294, %s1251_s25  }
  0x11   : > { %1603 = sst [smem:[#allocation18_spill]] %s1239_s22  ;;  %p101_p0 = scmp.ne.s32.totalorder %s1227_s19, %s1223_s18 }
  0x12   : > { %1604 = sst [smem:[#allocation19_spill]] %s1243_s23  ;;  %p1593_p1 = scmp.eq.s32.totalorder %s1343_s26, 0 }
  0x13   : > { %p158_p2 = scmp.ne.s32.totalorder %s1219_s17, %s1215_s16  ;;  %p159_p4 = scmp.eq.s32.totalorder %s1343_s26, 3 }
  0x14   : > { %p1353_p3 = por %p1593_p1, %p101_p0  ;;  %p164_p5 = scmp.ne.s32.totalorder %s1215_s16, %s1211_s15 }
  0x15   : > { %p165_p6 = scmp.eq.s32.totalorder %s803_s27, 3  ;;  %p1360_p7 = por %p159_p4, %p158_p2 }
  0x16   : > { %p808_p8 = scmp.ge.s32.totalorder %s1251_s25, 1  ;;  %p172_p10 = scmp.lt.s32.totalorder %s1251_s25, 5 }
  0x17   : > { %s1606_s30 = scalar_select %p1360_p7, 1, 0 }
  0x18   : > { %p1365_p9 = por %p165_p6, %p164_p5  ;;  %p1370_p11 = pnand %p808_p8, %p172_p10 }
  0x19   : > { %1607 = sst [smem:[#allocation20_spill]] %s1606_s30  ;;  %s1253_s7 = smov [#allocation4]  }
  0x1a   : > { %s1608_s5 = scalar_select %p1365_p9, 1, 0 }
  0x1b   : > { %s185_s8 = sshll.u32 %s1253_s7, 4  ;;  %p893_p12 = pneg %p1370_p11  ;;  %s186_s8 = int_to_ptr.vmem [resolvable:$true] %s185_s8 }
  0x1c   : > { %1609 = sst [smem:[#allocation21_spill]] %s1608_s5  ;;  %s28_s10 = sadd.s32 1, %s1243_s23 }
  0x1d   : > { %p1378_p13 = pnand %p893_p12, %p1593_p1  ;;  %s1026_s11 = scalar_lea.vmem %s186_s8, 128 }
  0x1e   : > { %p1027_p2 = scmp.ne.s32.totalorder %s186_s8, %s1026_s11  ;;  %p1034_p6 = scmp.lt.s32.totalorder %s186_s8, %s186_s8 }
  0x1f   : > { %p1017_p0 = pneg %p1378_p13  ;;  %p1035_p8 = scmp.lt.s32.totalorder %s1026_s11, %s1026_s11 }
  0x21   : > { %p1029_p4 = pnand %p1027_p2, %p1017_p0  ;;  %p1036_p10 = por %p1035_p8, %p1034_p6 }
  0x23   : > { %p1030_p5 = pneg %p1029_p4 }
  0x25   : > { %p1037_p9 = pnand %p1036_p10, %p1030_p5 }
  0x27   : > { %1040 = shalt.err (!%p1037_p9)
}
  0x28   : > { %s1612_s0 = sld [smem:[#allocation24_spill]]  ;;  %p29_p12 = scmp.ge.s32.totalorder %s28_s10, 2 }
  0x29   : > { %s31_s14 = sadd.s32 1, %s1247_s24  ;;  %s804_s18 = sshll.u32 %s1247_s24, 1 }
  0x2a   : > { %s88_s27 = sadd.s32 1, %s1231_s20  ;;  %s1654_s10 = smov (%p29_p12, %s28_s10), 0 }
  0x2b   : > { %1613 = sst [smem:[#allocation22_spill]] %s1654_s10  ;;  %s1656_s14 = smov (!%p29_p12, %s31_s14), %s1247_s24 }
  0x2c   : > { %s78_s7 = sadd.s32 %s1243_s23, %s804_s18  ;;  %p95_p9 = scmp.ne.s32.totalorder %s1231_s20, %s1227_s19 }
  0x2d   : > { %p33_p2 = scmp.ge.s32.totalorder %s1656_s14, 2  ;;  %p79_p4 = scmp.lt.s32.totalorder %s78_s7, 2 }
  0x2e   : > { %896 = dma.hbm_to_vmem [thread:$0]  (!%p1378_p13), %s1612_s0, 128, %s186_s8, [#allocation5]  }
  0x2f   : > { %p96_p5 = scmp.eq.s32.totalorder %s1251_s25, 0  ;;  %p913_p6 = scmp.lt.s32.totalorder %s1251_s25, 4 }
  0x30   : > { %s1658_s14 = smov (%p33_p2, %s1656_s14), 0  ;;  %s1660_s7 = smov (!%p79_p4, %s78_s7), 2 }
  0x31   : > { %1614 = sst [smem:[#allocation23_spill]] %s1658_s14  ;;  %s805_s8 = sshll.u32 %s1658_s14, 1 }
  0x32   : > { %p1407_p8 = por %p96_p5, %p95_p9  ;;  %s82_s12 = sadd.s32 %s805_s8, %s1654_s10 }
  0x33   : > { %s145_s13 = ssub.s32 %s1247_s24, %s1658_s14  ;;  %p83_p10 = scmp.lt.s32.totalorder %s82_s12, 2 }
  0x34   : > { %p146_p12 = scmp.eq.s32.totalorder %s145_s13, 0  ;;  %s207_s18 = sand.u32 1, %s1251_s25  }
  0x35   : > { %s209_s28 = sand.u32 1, %s1231_s20   ;;  %s1662_s12 = smov (!%p83_p10, %s82_s12), 2 }
  0x36   : > { %s1616_s0 = sadd.s32 1, %s1219_s17  ;;  %s85_s5 = ssub.s32 %s1660_s7, %s1662_s12 }
  0x37   : > { %s1419_s23 = scalar_select %p146_p12, %s1219_s17, %s1616_s0  }
  0x38   : > { %p86_p2 = scmp.eq.s32.totalorder %s85_s5, 0  ;;  %s812_s15 = sshll.u32 %s209_s28, 2 }
  0x39   : > { %s814_s4 = sshll.u32 %s1660_s7, 6  ;;  %s1617_s2 = sld [smem:[#allocation26_spill]] }
  0x3a   : > { %s1422_s30 = scalar_select %p86_p2, %s1231_s20, %s88_s27  }
  0x3b   : > { %s211_s14 = scalar_lea.vmem [#allocation9], %s812_s15  ;;  %p1431_p9 = pnand %p913_p6, %p1407_p8 }
  0x3c   : > { %s222_s10 = sshll.u32 %s211_s14, 4  ;;  %s815_s0 = sshll.u32 %s209_s28, 3  ;;  %s223_s10 = int_to_ptr.vmem [resolvable:$true] %s222_s10 }
  0x3d   : > { %s1619_s3 = sld [smem:[#allocation27_spill]]  ;;  %s1440_s12 = scalar_lea.sflag [#allocation5], %s207_s18 }
  0x3e   : > { %p1594_p4 = pneg %p1431_p9  ;;  %s1054_s15 = scalar_lea.vmem %s223_s10, 64 }
  0x3f   : > { %s220_s8 = scalar_lea.hbm %s1617_s2, %s814_s4  ;;  %p1055_p5 = scmp.ne.s32.totalorder %s223_s10, %s1054_s15 }
  0x40   : > { %s1254_s21 = smov [#allocation9]  }
  0x41   : > { %p1057_p6 = pnand %p1055_p5, %p1594_p4  ;;  %s1059_s22 = sshll.u32 %s1254_s21, 4  ;;  %s1060_s22 = int_to_ptr.vmem [resolvable:$false] %s1059_s22 }
  0x42   : > { %s1061_s14 = scalar_lea.vmem %s1060_s22, 128  ;;  %p1062_p10 = scmp.lt.s32.totalorder %s223_s10, %s1060_s22 }
  0x43   : > { %s1438_s27 = scalar_lea.hbm %s1619_s3, %s814_s4  ;;  %p1058_p8 = pneg %p1057_p6 }
  0x44   : > { %p1063_p12 = scmp.lt.s32.totalorder %s1061_s14, %s1054_s15 }
  0x46   : > { %p1064_p2 = por %p1063_p12, %p1062_p10 }
  0x48   : > { %p1065_p1 = pnand %p1064_p2, %p1058_p8 }
  0x4a   : > { %1068 = shalt.err (!%p1065_p1)
}
  0x4b   : > { %903 = dma.hbm_to_vmem [thread:$0]  (!%p1431_p9), %s220_s8, 64, %s223_s10, %s1440_s12  }
  0x4c   : > { %s233_s4 = scalar_lea.vmem [#allocation10], %s815_s0  ;;  %s1255_s11 = smov [#allocation7]  }
  0x4d   : > { %s243_s28 = sshll.u32 %s233_s4, 4  ;;  %s196_s18 = sshll.u32 %s1255_s11, 4  ;;  %s1450_s28 = int_to_ptr.vmem [resolvable:$true] %s243_s28  ;;  %s197_s18 = int_to_ptr.vmem [resolvable:$true] %s196_s18 }
  0x4e   : > { %s1080_s5 = scalar_lea.vmem %s197_s18, 128  ;;  %p1088_p8 = scmp.lt.s32.totalorder %s197_s18, %s197_s18 }
  0x4f   : > { %p1081_p5 = scmp.ne.s32.totalorder %s197_s18, %s1080_s5  ;;  %p1089_p1 = scmp.lt.s32.totalorder %s1080_s5, %s1080_s5 }
  0x51   : > { %p1083_p6 = pnand %p1081_p5, %p1017_p0  ;;  %p1090_p12 = por %p1089_p1, %p1088_p8 }
  0x53   : > { %p1084_p10 = pneg %p1083_p6 }
  0x55   : > { %p1091_p2 = pnand %p1090_p12, %p1084_p10 }
  0x57   : > { %1094 = shalt.err (!%p1091_p2)
}
  0x58   : > { %s1620_s1 = sld [smem:[#allocation25_spill]]  ;;  %s1108_s0 = scalar_lea.vmem %s1450_s28, 128 }
  0x59   : > { %p1109_p4 = scmp.ne.s32.totalorder %s1450_s28, %s1108_s0  ;;  %p1621_p0 = pneg %p1431_p9 }
  0x5a   : > { %s1256_s7 = smov [#allocation10]  }
  0x5b   : > { %p1111_p5 = pnand %p1109_p4, %p1621_p0  ;;  %s1113_s15 = sshll.u32 %s1256_s7, 4  ;;  %s1114_s15 = int_to_ptr.vmem [resolvable:$false] %s1113_s15 }
  0x5c   : > { %s1115_s21 = scalar_lea.vmem %s1114_s15, 256  ;;  %p1116_p10 = scmp.lt.s32.totalorder %s1450_s28, %s1114_s15 }
  0x5d   : > { %p1112_p6 = pneg %p1111_p5  ;;  %p1117_p8 = scmp.lt.s32.totalorder %s1115_s21, %s1108_s0 }
  0x5e   : > { %899 = dma.hbm_to_vmem [thread:$0]  (!%p1378_p13), %s1620_s1, 128, %s197_s18, [#allocation8]  }
  0x5f   : > { %p1118_p1 = por %p1117_p8, %p1116_p10 }
  0x61   : > { %p1119_p12 = pnand %p1118_p1, %p1112_p6 }
  0x63   : > { %1122 = shalt.err (!%p1119_p12)
}
  0x64   : > { %s1257_s9 = smov 192   ;;  %s1258_s22 = smov 64  }
  0x65   : > { %s1259_s14 = smov 4   ;;  %255 = sbr.rel (%p1370_p11) target bundleno = 956 (0x3bc), region = 36 }
  0x66   : > { %906 = dma.hbm_to_vmem [thread:$0]  (!%p1431_p9), %s1438_s27, 128, %s1450_s28, %s1440_s12, %s1257_s9, %s1258_s22, %s1259_s14  }
  0x67   : > { %p1622_p13 = scmp.eq.s32.totalorder (!%p1370_p11), %s1343_s26, 0 }
  0x6a   : > { %1194 = dma.done.wait (%p1622_p13), [#allocation5], 128   ;;  %p1623_p4 = pmov %p1622_p13 }
  0x6c   : > { %1196 = vsyncadd (%p1623_p4), [#allocation5], 4294967168  ;;  %p1624_p2 = pmov %p1623_p4 }
  0x6e   : > { %1198 = dma.done.wait (%p1624_p2), [#allocation8], 128   ;;  %p1625_p0 = pmov %p1624_p2 }
  0x6f   : > { %s265_s13 = sand.u32 1, %s1343_s26   ;;  %s267_s27 = sand.u32 1, %s1227_s19  }
  0x70   : > { %1200 = vsyncadd (%p1625_p0), [#allocation8], 4294967168  ;;  %s821_s12 = sshll.u32 %s267_s27, 2  ;;  %s266_s6 = scalar_lea.sflag [#allocation5], %s265_s13 }
  0x71   : > { %s1483_s4 = scalar_lea.vmem [#allocation9], %s821_s12 }
  0x72   : > { %1202 = dma.done.wait (%p1353_p3), %s266_s6, 192  }
  0x73   : > { %1204 = vsyncadd (%p1353_p3), %s266_s6, 4294967104  ;;  %s822_s28 = sshll.u32 %s267_s27, 3  ;;  %s1595_s11 = sand.u32 1, %s1215_s16  }
  0x74   : > { %s1492_s18 = sshll.u32 %s1595_s11, 3  ;;  %s1494_s5 = scalar_lea.vmem [#allocation10], %s822_s28 }
  0x75   : > { %s1626_s10 = sld [smem:[#allocation17_spill]] }
  0x7b   : > { %p824_p11 = scmp.ne.s32.totalorder %s1626_s10, 0 }
  0x7d   : > { %320 = sbr.rel (%p824_p11) target bundleno = 133 (0x85), region = 56 }
  0x82   : > { %vm321_vm0 = vcmask 130048   ;;  %v1260_v0 = vmov 0.0  }
  0x83   : > { %322 = vst.msk [vmem:[#allocation2] sm:$0xff] %vm321_vm0, %v1260_v0  ;;  %323 = vst.msk [vmem:[#allocation3] sm:$0xff] %vm321_vm0, %v1260_v0 }
  0x84   : > { %324 = vst.msk [vmem:[#allocation3 + $0x8] sm:$0xff] %vm321_vm0, %v1260_v0 }
  0x85 PF: > { %s1627_s29 = sld [smem:[#allocation18_spill]] }
  0x86   : > { %s1628_s8 = sld [smem:[#allocation17_spill]] }
  0x8b   : > { %s825_s0 = sshll.u32 %s1627_s29, 1 }
  0x8c   : > { %s326_s7 = sadd.s32 %s1628_s8, %s825_s0 }
  0x8d   : > { %s826_s15 = sshll.u32 %s326_s7, 7 }
  0x8e   : > { %s328_s21 = ssub.s32 300, %s826_s15 }
  0x8f   : > { %p329_p3 = scmp.gt.s32.totalorder %s328_s21, 0  ;;  %p827_p9 = scmp.lt.s32.totalorder %s328_s21, 128 }
  0x91   : > { %s1664_s21 = smov (!%p329_p3, %s328_s21), 0 }
  0x92   : > { %s1666_s21 = smov (!%p827_p9, %s1664_s21), 128 }
  0x93   : > { %p832_p5 = scmp.ge.s32.totalorder %s1666_s21, 128 }
  0x95   : > { %336 = sbr.rel (%p832_p5) target bundleno = 163 (0xa3), region = 60 }
  0x9a   : > { %v337_v1 = vlaneseq  ;;  %v341_v2 = vstv %s1666_s21  ;;  %v339_v4 = vld [vmem:[%s1494_s5] sm:$0xf]  ;;  %v340_v5 = vld [vmem:[%s1494_s5 + $0x4] sm:$0xf]  ;;  %v348_v6 = vld [vmem:[%s1483_s4] sm:$0xf] }
  0x9c   : > { %v338_v3 = vand.u32 127, %v337_v1 }
  0x9e   : > { %vm342_vm1 = vcmp.lt.s32.totalorder %v338_v3, %v341_v2 }
  0x9f   : > { %vm343_vm2 = vmpackc.low %vm342_vm1, %vm342_vm1 }
  0xa0   : > { %v344_v7 = vsel %vm343_vm2, %v339_v4, 0  ;;  %v345_v8 = vsel %vm343_vm2, %v340_v5, 0  ;;  %v349_v9 = vsel %vm343_vm2, %v348_v6, 0 }
  0xa1   : > { %346 = vst [vmem:[%s1494_s5] sm:$0xf] %v344_v7  ;;  %347 = vst [vmem:[%s1494_s5 + $0x4] sm:$0xf] %v345_v8 }
  0xa2   : > { %350 = vst [vmem:[%s1483_s4] sm:$0xf] %v349_v9 }
  0xa3 PF: > { %v1261_v11 = vmov 0.0   ;;  %vm1262_vm3 = vmmov 0   ;;  %v354_v13 = vld [vmem:[#allocation2] sm:$0xff]  ;;  %v404_v14 = vld [vmem:[#allocation3] sm:$0xff]  ;;  %vm402_vm4 = vcmask 130048   ;;  %v405_v21 = vld [vmem:[#allocation3 + $0x8] sm:$0xff] }
  0xa4   : > { %850 = vmatprep.subr.bf16.mxu0 %v1261_v11  ;;  %856 = vmatprep.subr.bf16.mxu1 %v1261_v11  ;;  %s1629_s9 = sld [smem:[#allocation17_spill]] }
  0xa5   : > { %852 = vmatprep.mubr.msk.bf16.mxu0 %vm1262_vm3, %v1261_v11  ;;  %858 = vmatprep.mubr.msk.bf16.mxu1 %vm1262_vm3, %v1261_v11 }
  0xa8   : > { %v1014_v10 = vld [vmem:[%s1494_s5] sm:$0xff]  }
  0xa9   : > { %851 = vmatpush3.bf16.xpose.msra.mxu0 %v1014_v10  ;;  %857 = vmatpush3.bf16.xpose.msra.mxu1 %v1014_v10  ;;  %v351_v12 = vld [vmem:[%s1483_s4] sm:$0xf] }
  0xaa   : > { %p834_p6 = scmp.ne.s32.totalorder %s1629_s9, 1 }
  0xab   : > { %s1630_s22 = sld [smem:[#allocation18_spill]] (!%p834_p6) }
  0xb0   : > { %853 = vmatmul.mubr.bf16.vlgmr.msra.gmra.mxu0 %v351_v12  ;;  %859 = vmatmul.mubr.bf16.vlgmr.msra.gmra.mxu1 %v1014_v10 }
  0xb1   : > { %p662_p10 = scmp.eq.s32.totalorder (!%p834_p6), %s1630_s22, 0 }
 0x170   : > { %v395_v15 = vpop.f32.mrf.mxu0  ;;  %v440_v16 = vpop.f32.mrf.mxu1 }
 0x171   : > { %v401_v17 = vadd.f32 %v395_v15, %v354_v13  ;;  %v447_v18 = vadd.f32 %v440_v16, %v404_v14 }
 0x172   : > { %v854_v19 = vpop.f32.mrf.mxu0  ;;  %v860_v20 = vpop.f32.mrf.mxu1 }
 0x173   : > { %403 = vst.msk [vmem:[#allocation2] sm:$0xff] %vm402_vm4, %v401_v17  ;;  %449 = vst.msk [vmem:[#allocation3] sm:$0xff] %vm402_vm4, %v447_v18  ;;  %454 = sbr.rel (%p834_p6) target bundleno = 929 (0x3a1), region = 64 }
 0x174   : > { %v398_v22 = vpop.f32.mrf.mxu0  ;;  %v443_v23 = vpop.f32.mrf.mxu1 }
 0x175   : > { %v448_v24 = vadd.f32 %v443_v23, %v405_v21 }
 0x176   : > { %v855_v25 = vpop.f32.mrf.mxu0  ;;  %v861_v26 = vpop.f32.mrf.mxu1 }
 0x177   : > { %450 = vst.msk [vmem:[#allocation3 + $0x8] sm:$0xff] %vm402_vm4, %v448_v24 }
 0x178   : > { %v455_v27 = vld [vmem:[#allocation4] sm:$0xff]  ;;  %vm488_vm5 = vcmask 64512   ;;  %v644_v48 = vld [vmem:[#allocation7] sm:$0xff] }
 0x179   : > { %456 = vxpose.xlu0.b32.start.end [1/1] (short) (narrow) %v455_v27, 16  ;;  %862 = vmatprep.subr.mxu0 %v455_v27  ;;  %v600_v28 = vmul.f32 %v455_v27, %v455_v27  ;;  %v630_v42 = vand.u32 2147483647, %v455_v27  ;;  %v645_v52 = vsub.f32 %v455_v27, %v644_v48 }
 0x17a   : > { %863 = vmatpush3.msra.mxu0 %v455_v27  ;;  %v570_v32 = vld [vmem:[#allocation2] sm:$0xff]  ;;  %v583_v37 = vld [vmem:[#allocation3] sm:$0xff] }
 0x17b   : > { %v601_v29 = vsel %vm402_vm4, %v600_v28, 0.0  ;;  %v571_v33 = vmul.f32 %v570_v32, %v455_v27  ;;  %v631_v46 = vsub.f32 1.0, %v600_v28  ;;  %v646_v55 = vmul.f32 %v645_v52, %v645_v52 }
 0x17c   : > { %602 = vadd.xlane.f32.xlu1 %v601_v29 }
 0x17d   : > { %v572_v34 = vsel %vm402_vm4, %v571_v33, 0.0  ;;  %v632_v51 = vmul.f32 %v631_v46, %v630_v42  ;;  %v647_v59 = vsel %vm402_vm4, %v646_v55, 0.0 }
 0x17e   : > { %v584_v35 = vld [vmem:[#allocation3 + $0x8] sm:$0xff] }
 0x17f   : > { %v633_v54 = vsel %vm402_vm4, %v632_v51, 0.0 }
 0x1aa   : > { %573 = vadd.xlane.f32.xlu0 %v572_v34 }
 0x1f5   : > { %v472_v30 = vpop.trf.xlu0 }
 0x1f6   : > { %864 = vmatprep.mubr.msk.f32.mxu0 %vm488_vm5, %v472_v30 }
 0x1f9   : > { %v473_v31 = vpop.trf.xlu0 }
 0x1fa   : > { %865 = vmatmul.mubr.msk.f32.vlgmr.msra.gmra.mxu0 %vm488_vm5, %v473_v31 }
 0x205   : > { %v603_v0 = vpop.xlane.xlu1 %602 }
 0x206   : > { %v604_v1 = vrot.slane %v603_v0, 4 }
 0x208   : > { %v605_v2 = vadd.f32 %v604_v1, %v603_v0 }
 0x20a   : > { %v606_v3 = vrot.slane %v605_v2, 2 }
 0x20c   : > { %v607_v8 = vadd.f32 %v606_v3, %v605_v2 }
 0x20e   : > { %v608_v14 = vrot.slane %v607_v8, 1 }
 0x210   : > { %v609_v22 = vadd.f32 %v608_v14, %v607_v8 }
 0x233   : > { %v574_v56 = vpop.xlane.xlu0 %573 }
 0x234   : > { %v575_v57 = vrot.slane %v574_v56, 4 }
 0x236   : > { %v576_v58 = vadd.f32 %v575_v57, %v574_v56 }
 0x238   : > { %v577_v60 = vrot.slane %v576_v58, 2 }
 0x23a   : > { %v578_v61 = vadd.f32 %v577_v60, %v576_v58 }
 0x23c   : > { %v579_v62 = vrot.slane %v578_v61, 1 }
 0x23e   : > { %v580_v63 = vadd.f32 %v579_v62, %v578_v61 }
 0x240   : > { %867 = vpush %v580_v63 }
 0x271   : > { %s868_s14 = spop %867 }
 0x272   : > { %s582_s11 = smul.f32 -32.0, %s868_s14 }
 0x2ba   : > { %v866_v36 = vpop.f32.mrf.mxu0 }
 0x2bb   : > { %v586_v38 = vmul.f32 %v866_v36, %v584_v35  ;;  %v613_v44 = vmul.f32 %v866_v36, %v866_v36 }
 0x2bc   : > { %v561_v39 = vpop.f32.mrf.mxu0 }
 0x2bd   : > { %v585_v40 = vmul.f32 %v583_v37, %v561_v39  ;;  %v612_v41 = vmul.f32 %v561_v39, %v561_v39  ;;  %v588_v43 = vsel %vm402_vm4, %v586_v38, 0.0  ;;  %v615_v50 = vsel %vm402_vm4, %v613_v44, 0.0 }
 0x2bf   : > { %v587_v45 = vsel %vm402_vm4, %v585_v40, 0.0  ;;  %v614_v49 = vsel %vm402_vm4, %v612_v41, 0.0 }
 0x2c0   : > { %v589_v47 = vadd.f32 %v588_v43, %v587_v45  ;;  %v616_v53 = vadd.f32 %v615_v50, %v614_v49 }
 0x2c2   : > { %590 = vadd.xlane.f32.xlu1 %v589_v47 }
 0x2c6   : > { %617 = vadd.xlane.f32.xlu1 %v616_v53 }
 0x2ca   : > { %634 = vadd.xlane.f32.xlu1 %v633_v54 }
 0x2ce   : > { %648 = vadd.xlane.f32.xlu1 %v647_v59 }
 0x34b   : > { %v591_v4 = vpop.xlane.xlu1 %590 }
 0x34c   : > { %v592_v5 = vrot.slane %v591_v4, 4 }
 0x34e   : > { %v593_v6 = vadd.f32 %v592_v5, %v591_v4 }
 0x34f   : > { %v618_v7 = vpop.xlane.xlu1 %617 }
 0x350   : > { %v594_v9 = vrot.slane %v593_v6, 2  ;;  %v619_v10 = vrot.slane %v618_v7, 4 }
 0x352   : > { %v620_v11 = vadd.f32 %v619_v10, %v618_v7  ;;  %v595_v12 = vadd.f32 %v594_v9, %v593_v6 }
 0x353   : > { %v635_v13 = vpop.xlane.xlu1 %634 }
 0x354   : > { %v621_v15 = vrot.slane %v620_v11, 2  ;;  %v636_v16 = vrot.slane %v635_v13, 4  ;;  %v596_v17 = vrot.slane %v595_v12, 1 }
 0x356   : > { %v637_v18 = vadd.f32 %v636_v16, %v635_v13  ;;  %v597_v19 = vadd.f32 %v596_v17, %v595_v12  ;;  %v622_v20 = vadd.f32 %v621_v15, %v620_v11 }
 0x357   : > { %v649_v21 = vpop.xlane.xlu1 %648 }
 0x358   : > { %v638_v23 = vrot.slane %v637_v18, 2  ;;  %v650_v24 = vrot.slane %v649_v21, 4  ;;  %869 = vpush %v597_v19  ;;  %v623_v25 = vrot.slane %v622_v20, 1 }
 0x359   : > { %871 = vpush %v609_v22 }
 0x35a   : > { %v651_v26 = vadd.f32 %v650_v24, %v649_v21  ;;  %v624_v27 = vadd.f32 %v623_v25, %v622_v20  ;;  %v639_v28 = vadd.f32 %v638_v23, %v637_v18 }
 0x35c   : > { %v652_v29 = vrot.slane %v651_v26, 2  ;;  %873 = vpush %v624_v27  ;;  %v640_v30 = vrot.slane %v639_v28, 1 }
 0x35e   : > { %v653_v31 = vadd.f32 %v652_v29, %v651_v26  ;;  %v641_v32 = vadd.f32 %v640_v30, %v639_v28 }
 0x360   : > { %875 = vpush %v641_v32  ;;  %v654_v33 = vrot.slane %v653_v31, 1 }
 0x362   : > { %v655_v34 = vadd.f32 %v654_v33, %v653_v31 }
 0x364   : > { %877 = vpush %v655_v34 }
 0x389   : > { %s870_s13 = spop %869 }
 0x38a   : > { %s872_s27 = spop %871  ;;  %s599_s1 = sadd.f32 %s870_s13, %s582_s11 }
 0x38b   : > { %s626_s12 = smul.f32 10.666667, %s872_s27 }
 0x38c   : > { %s611_s4 = smul.f32 0.1, %s872_s27  ;;  %s1631_s27 = scalar_lea.vmem [#allocation11], %s1492_s18 }
 0x38d   : > { %s874_s6 = spop %873 }
 0x38e   : > { %s627_s28 = ssub.f32 %s874_s6, %s626_s12 }
 0x38f   : > { %s658_s29 = sadd.f32 614400.0, %s611_s4 }
 0x390   : > { %s628_s5 = sadd.f32 455.1111, %s627_s28 }
 0x391   : > { %s876_s10 = spop %875 }
 0x392   : > { %s629_s8 = smul.f32 0.2, %s628_s5 }
 0x393   : > { %s643_s7 = smul.f32 0.3, %s876_s10 }
 0x394   : > { %s659_s0 = sadd.f32 %s658_s29, %s629_s8 }
 0x395   : > { %s878_s15 = spop %877 }
 0x396   : > { %s660_s21 = sadd.f32 %s659_s0, %s643_s7  ;;  %s657_s9 = smul.f32 0.5, %s878_s15 }
 0x398   : > { %s661_s26 = sadd.f32 %s660_s21, %s657_s9 }
 0x39a   : > { %s1668_s26 = smov (!%p662_p10, %s661_s26), 0.0 }
 0x39b   : > { %s664_s2 = sadd.f32 %s1668_s26, %s599_s1 }
 0x39d   : > { %s665_s3 = smul.f32 0.00041666668, %s664_s2 }
 0x39f   : > { %v666_v35 = vstv %s665_s3 }
 0x3a0   : > { %667 = vst [vmem:[%s1631_s27] sm:$0xff] %v666_v35 }
 0x3a1 PF: > { %s1632_s12 = sld [smem:[#allocation18_spill]]  ;;  %s1636_s8 = scalar_lea.vmem [#allocation11], %s1492_s18 }
 0x3a2   : > { %s1634_s22 = sld [smem:[#allocation28_spill]]  ;;  %s682_s14 = sshll.u32 %s1636_s8, 4  ;;  %s683_s14 = int_to_ptr.vmem [resolvable:$true] %s682_s14 }
 0x3a3   : > { %s1637_s11 = sand.u32 1, %s1215_s16   ;;  %s1123_s1 = scalar_lea.vmem %s683_s14, 128 }
 0x3a4   : > { %s669_s13 = scalar_lea.sflag [#allocation6], %s1637_s11  ;;  %p1124_p8 = scmp.ne.s32.totalorder %s683_s14, %s1123_s1 }
 0x3a5   : > { %s1263_s2 = smov [#allocation11]  }
 0x3a6   : > { %p1125_p1 = pnand %p1124_p8, %p1360_p7  ;;  %s1127_s3 = sshll.u32 %s1263_s2, 4  ;;  %s1128_s3 = int_to_ptr.vmem [resolvable:$false] %s1127_s3 }
 0x3a7   : > { %s838_s4 = sshll.u32 %s1632_s12, 7  ;;  %s1129_s26 = scalar_lea.vmem %s1128_s3, 256 }
 0x3a8   : > { %s1635_s10 = smov %s1634_s22  ;;  %s680_s29 = scalar_lea.hbm %s1634_s22, %s838_s4 }
 0x3a9   : > { %p1126_p12 = pneg %p1125_p1  ;;  %p1130_p13 = scmp.lt.s32.totalorder %s683_s14, %s1128_s3 }
 0x3aa   : > { %p1131_p4 = scmp.lt.s32.totalorder %s1129_s26, %s1123_s1 }
 0x3ac   : > { %p1132_p2 = por %p1131_p4, %p1130_p13 }
 0x3ae   : > { %p1133_p0 = pnand %p1132_p2, %p1126_p12 }
 0x3b0   : > { %1136 = shalt.err (!%p1133_p0)
}
 0x3b1   : > { %s1137_s0 = scalar_lea.hbm %s680_s29, 128  ;;  %s1141_s15 = scalar_lea.hbm %s1635_s10, 256 }
 0x3b2   : > { %p1138_p11 = scmp.ne.s32.totalorder %s680_s29, %s1137_s0  ;;  %p1142_p5 = scmp.lt.s32.totalorder %s680_s29, %s1635_s10 }
 0x3b3   : > { %p1143_p6 = scmp.lt.s32.totalorder %s1141_s15, %s1137_s0 }
 0x3b4   : > { %p1139_p3 = pnand %p1138_p11, %p1360_p7 }
 0x3b5   : > { %p1144_p10 = por %p1143_p6, %p1142_p5 }
 0x3b6   : > { %p1140_p9 = pneg %p1139_p3 }
 0x3b8   : > { %p1145_p8 = pnand %p1144_p10, %p1140_p9 }
 0x3ba   : > { %1148 = shalt.err (!%p1145_p8)
}
 0x3bb   : > { %891 = dma.vmem_to_hbm [thread:$0]  (%p1360_p7), %s683_s14, 128, %s680_s29, %s669_s13  }
 0x3bc PF: > { %s1638_s27 = sld [smem:[#allocation16_spill]]  ;;  %p916_p1 = scmp.ge.s32.totalorder %s1251_s25, 2 }
 0x3bd   : > { %s1639_s12 = sld [smem:[#allocation21_spill]] }
 0x3c2   : > { %s694_s4 = sand.u32 1, %s1638_s27  }
 0x3c3   : > { %p1640_p12 = scmp.ne.s32.totalorder %s1639_s12, 0  ;;  %s695_s28 = scalar_lea.sflag [#allocation6], %s694_s4 }
 0x3c5   : > { %p908_p13 = pnand %p916_p1, %p1640_p12 }
 0x3c7   : > { %p909_p4 = pneg %p908_p13 }
 0x3c9   : > { %1206 = dma.done.wait (%p909_p4), %s695_s28, 128  }
 0x3ca   : > { %1208 = vsyncadd (%p909_p4), %s695_s28, 4294967168  ;;  %s19_s25 = sadd.s32 1, %s1251_s25   ;;  %s1641_s21 = sld [smem:[#allocation19_spill]] }
 0x3cb   : > { %p16_p2 = scmp.ge.s32.totalorder %s19_s25, 6   ;;  %s1642_s6 = sld [smem:[#allocation22_spill]] }
 0x3cc   : > { %s1643_s5 = sld [smem:[#allocation23_spill]]  ;;  %s1644_s15 = smov %s1215_s16 }
 0x3cd   : > { %s1645_s16 = smov %s1219_s17  ;;  %s1646_s17 = smov %s1419_s23 }
 0x3ce   : > { %s1647_s18 = smov %s1227_s19  ;;  %s1648_s19 = smov %s1231_s20 }
 0x3cf   : > { %s1649_s20 = smov %s1422_s30  ;;  %s1650_s22 = smov %s1247_s24 }
 0x3d0   :  { %18 = sbr.rel (!%p16_p2) target bundleno = 15 (0xf), region = 111 }
 0x3d1   : > { %s1651_s23 = smov %s1642_s6 }
 0x3d2   : > { %s1652_s24 = smov %s1643_s5 }
 0x3d5   :  { %700 = vsyncpa [#allocation5], 1 }
 0x3d6   :  { %702 = vsyncpa [#allocation5 + $0x1], 1 }
 0x3d7   :  { %703 = vsyncpa [#allocation8], 1 }
 0x3d8   :  { %704 = vsyncpa [#allocation6], 1 }
 0x3d9   :  { %706 = vsyncpa [#allocation6 + $0x1], 1 }

</bundles_post_ra>
